<compile_context>
chip_gen: v7x
topology: tpu7x:2x2x1
jax: 0.10.0
libtpu: 0.0.40
codegen_flags: <defaults>
</compile_context>

<pallas_src>
import functools

import jax
import jax.numpy as jnp
from jax.experimental import pallas as pl
from jax.experimental.pallas import tpu as pltpu


# ----------------------------------------------------------------------------
# Kernel
# ----------------------------------------------------------------------------
def _pooler_predictor_kernel(x_ref, wd_ref, bd_ref, w1_ref, b1_ref, w2_ref,
                             b2_ref, out_ref, acc_ref, *, inv_kmers, b2_in_smem):
    sj = pl.program_id(1)
    n_sj = pl.num_programs(1)

    # Widening token-sum of the current (bb, st, H) bf16 tile.  The f32
    # conversion is fused into the reduce; no full f32 copy is kept live.
    tile_sum = jnp.sum(x_ref[...], axis=1, dtype=jnp.float32)        # (bb, H)

    @pl.when(sj == 0)
    def _():
        # Initialize the running sum and drop the first ([CLS]-style) token;
        # read the endpoint row straight from the ref (short live range).
        acc_ref[...] = -x_ref[:, 0, :].astype(jnp.float32)

    acc_ref[...] += tile_sum

    @pl.when(sj == n_sj - 1)
    def _():
        # Drop the last ([SEP]-style) token and run the dense epilogue once.
        last = x_ref[:, x_ref.shape[1] - 1, :].astype(jnp.float32)   # (bb, H)
        mean_tok = (acc_ref[...] - last) * inv_kmers                 # (bb, H)
        pooled = jnp.tanh(
            jnp.dot(mean_tok, wd_ref[...], preferred_element_type=jnp.float32)
            + bd_ref[...])                                           # (bb, H)
        h = (jnp.dot(pooled, w1_ref[...], preferred_element_type=jnp.float32)
             + b1_ref[...])                                          # (bb, H2)
        # Final Linear(H2, 1): VPU multiply + lane reduction.
        b2 = b2_ref[0, 0] if b2_in_smem else b2_ref[...]
        logit = jnp.sum(h * w2_ref[...], axis=-1, keepdims=True) + b2
        out_ref[...] = logit.astype(out_ref.dtype)


# ----------------------------------------------------------------------------
# Tile selection (joint VMEM budget)
# ----------------------------------------------------------------------------
def _pick_tiles(B, S, H, x_itemsize, fixed_bytes, budget, sub,
                batch_block, seq_block):
    """Pick (bb, st) so 2*bb*st*H*itemsize + fixed_bytes + bb*H*4 <= budget."""
    # Batch-tile candidates: multiples of 8 dividing B, largest first, capped
    # at B//2 (when B >= 16) so the "parallel" axis has >= 2 blocks (v7x
    # megacore), and at 256.
    if batch_block is not None:
        bb_cands = [batch_block]
    else:
        bb_cap = min(256, max(8, B // 2)) if B >= 16 else B
        bb_cands = sorted({d for d in range(8, min(B, bb_cap) + 1, 8)
                           if B % d == 0}, reverse=True) or [B]
    # Sequence-tile candidates: multiples of the sublane pack dividing S,
    # largest first; the full extent is always legal even when unaligned.
    if seq_block is not None:
        st_cands = [seq_block]
    else:
        st_cands = sorted({d for d in range(sub, S + 1, sub) if S % d == 0},
                          reverse=True)
        if S not in st_cands:
            st_cands = [S] + st_cands

    best = None
    for bb in bb_cands:
        stream_budget = budget - fixed_bytes - bb * H * 4   # f32 accumulator
        for st in st_cands:                                  # descending
            if 2 * bb * st * H * x_itemsize <= stream_budget:
                if best is None or bb * st > best[0] * best[1]:
                    best = (bb, st)
                break
    if best is None:
        best = (bb_cands[-1], st_cands[-1])                  # smallest legal
    return best


def _validate_tiles(B, S, bb, st):
    if B % bb != 0 or S % st != 0:
        raise ValueError(
            f"batch_block={bb} / seq_block={st} must divide (B={B}, S={S})")
    if bb % 8 != 0 and bb != B:
        raise ValueError("batch_block must be a multiple of 8 or the full batch")
    if st % 8 != 0 and st != S:
        raise ValueError("seq_block must be a multiple of 8 or the full sequence")


# ----------------------------------------------------------------------------
# Wrapper
# ----------------------------------------------------------------------------
def trafica_pooler_predictor(hidden_states, params, *, batch_block=None,
                             seq_block=None, vmem_limit_bytes=None):
    """hidden_states: (B, S, H). Returns (B, 1) f32 logits."""
    B, S, H = hidden_states.shape
    if S <= 2:
        raise ValueError("sequence length must be > 2 (mean over tokens [1:-1])")
    wd, bd, w1, b1, w2, b2 = (params["wd"], params["bd"], params["w1"],
                              params["b1"], params["w2"], params["b2"])
    H2 = w1.shape[1]

    x_itemsize = jnp.dtype(hidden_states.dtype).itemsize
    sub = 16 if x_itemsize < 4 else 8
    weight_bytes = sum(int(a.size) * jnp.dtype(a.dtype).itemsize
                       for a in (wd, bd, w1, b1, w2, b2))

    # Per-generation VMEM budget (v5e/v6e 128 MiB, v7x 64 MiB per TC).
    try:
        vmem_phys = int(pltpu.get_tpu_info().vmem_capacity_bytes)
    except Exception:
        vmem_phys = 64 << 20   # conservative: v7x per-TensorCore VMEM
    budget = int(0.45 * vmem_phys)

    bb, st = _pick_tiles(B, S, H, x_itemsize, 2 * weight_bytes, budget, sub,
                         batch_block, seq_block)
    _validate_tiles(B, S, bb, st)

    stream_tile_bytes = bb * st * H * x_itemsize
    need = (2 * stream_tile_bytes + 2 * weight_bytes + bb * H * 4
            + bb * 4 + (2 << 20))
    if vmem_limit_bytes is None:
        vmem_limit_bytes = min(int(0.9 * vmem_phys),
                               max(32 << 20, int(1.5 * need)))

    grid = (B // bb, S // st)

    cost = pl.CostEstimate(
        flops=int(2 * B * (H * H + H * H2 + H2)),
        transcendentals=int(B * H),
        bytes_accessed=int(hidden_states.size) * x_itemsize + weight_bytes + B * 4,
    )

    def build(tuned):
        if tuned:
            # Single-buffer the constant-index weights; triple-buffer tiny
            # streamed tiles (DMA-latency sensitive), default otherwise.
            def const(shape):
                return pl.BlockSpec(shape, lambda i, j: (0,) * len(shape),
                                    pipeline_mode=pl.Buffered(1))
            if stream_tile_bytes < (1 << 20):
                x_spec = pl.BlockSpec((bb, st, H), lambda i, j: (i, j, 0),
                                      pipeline_mode=pl.Buffered(3))
            else:
                x_spec = pl.BlockSpec((bb, st, H), lambda i, j: (i, j, 0))
            b2_spec = pl.BlockSpec(memory_space=pltpu.MemorySpace.SMEM)
        else:
            def const(shape):
                return pl.BlockSpec(shape, lambda i, j: (0,) * len(shape))
            x_spec = pl.BlockSpec((bb, st, H), lambda i, j: (i, j, 0))
            b2_spec = const((1, 1))

        kernel = functools.partial(_pooler_predictor_kernel,
                                   inv_kmers=1.0 / float(S - 2),
                                   b2_in_smem=tuned)
        return pl.pallas_call(
            kernel,
            out_shape=jax.ShapeDtypeStruct((B, 1), jnp.float32),
            grid_spec=pltpu.PrefetchScalarGridSpec(
                num_scalar_prefetch=0,
                grid=grid,
                in_specs=[
                    x_spec,          # hidden_states (streamed)
                    const((H, H)),   # pooler dense weight, stored (in, out)
                    const((1, H)),   # pooler dense bias
                    const((H, H2)),  # predictor layer-1 weight, stored (in, out)
                    const((1, H2)),  # predictor layer-1 bias
                    const((1, H2)),  # predictor layer-2 weight (row)
                    b2_spec,         # predictor layer-2 bias (scalar)
                ],
                out_specs=pl.BlockSpec((bb, 1), lambda i, j: (i, 0)),
                scratch_shapes=[pltpu.VMEM((bb, H), jnp.float32)],
            ),
            compiler_params=pltpu.CompilerParams(
                dimension_semantics=("parallel", "arbitrary"),
                vmem_limit_bytes=vmem_limit_bytes,
            ),
            cost_estimate=cost,
        )

    # Try the tuned config first; fall back to the conservative config if the
    # local jax/Mosaic version rejects Buffered(1) / SMEM float inputs.
    last_err = None
    for tuned in (True, False):
        try:
            out = build(tuned)(hidden_states, wd, bd, w1, b1, w2, b2)
            return jax.block_until_ready(out)
        except Exception as e:   # pragma: no cover (conservative fallback)
            last_err = e
    raise last_err


# ----------------------------------------------------------------------------
# Params / reference / self-test
# ----------------------------------------------------------------------------
def init_params(key, H):
    """Deterministic synthetic parameters; shapes match the nn.Module __init__."""
    H2 = H // 2
    ks = jax.random.split(key, 6)
    scale = 0.05
    return {
        # wd / w1 stored as (in, out) == W.T relative to torch nn.Linear's (out, in);
        # w2 stored as the (1, H2) torch row directly (used via VPU mul + reduce).
        "wd": scale * jax.random.normal(ks[0], (H, H), jnp.float32),
        "bd": scale * jax.random.normal(ks[1], (1, H), jnp.float32),
        "w1": scale * jax.random.normal(ks[2], (H, H2), jnp.float32),
        "b1": scale * jax.random.normal(ks[3], (1, H2), jnp.float32),
        "w2": scale * jax.random.normal(ks[4], (1, H2), jnp.float32),
        "b2": scale * jax.random.normal(ks[5], (1, 1), jnp.float32),
    }


def reference_forward(hidden_states, params):
    """Pure-JAX reference of the same math (for correctness check)."""
    mean_tok = jnp.mean(hidden_states[:, 1:-1, :], axis=1)
    pooled = jnp.tanh(mean_tok @ params["wd"] + params["bd"])
    h = pooled @ params["w1"] + params["b1"]
    return h @ params["w2"].T + params["b2"]


if __name__ == "__main__":
    # Small but tiling-exercising shapes: 2 batch blocks x 4 sequence tiles,
    # H a multiple of 128 so the (8,128) path (not just full-extent blocks)
    # is taken, and the endpoint subtraction lands on different tiles.
    B, S, H = 16, 64, 128
    key = jax.random.PRNGKey(0)
    k_x, k_p = jax.random.split(key)

    hidden_f32 = jax.random.normal(k_x, (B, S, H), jnp.float32)
    hidden_bf16 = hidden_f32.astype(jnp.bfloat16)   # stream bf16, accumulate f32
    params = init_params(k_p, H)

    logits = trafica_pooler_predictor(hidden_bf16, params, seq_block=16)
    logits = jax.block_until_ready(logits)

    # Reference on the same bf16-rounded values (upcast to f32).
    ref = reference_forward(hidden_bf16.astype(jnp.float32), params)
    assert logits.shape == (B, 1)
    max_err = float(jnp.max(jnp.abs(logits - ref)))
    assert max_err < 3e-3, f"mismatch vs reference: max abs err {max_err}"

    print("KERNEL_OK")
</pallas_src>

<mosaic_0001>
module attributes {stable_mosaic.version = 11 : i64} {
  func.func @_pooler_predictor_kernel(%arg0: i32, %arg1: i32, %arg2: memref<8x16x128xbf16, #tpu.memory_space<vmem>>, %arg3: memref<128x128xf32, #tpu.memory_space<vmem>>, %arg4: memref<1x128xf32, #tpu.memory_space<vmem>>, %arg5: memref<128x64xf32, #tpu.memory_space<vmem>>, %arg6: memref<1x64xf32, #tpu.memory_space<vmem>>, %arg7: memref<1x64xf32, #tpu.memory_space<vmem>>, %arg8: memref<1x1xf32, #tpu.memory_space<vmem>>, %arg9: memref<8x1xf32, #tpu.memory_space<vmem>>, %arg10: memref<8x128xf32, #tpu.memory_space<vmem>>) attributes {dimension_semantics = [#tpu.dimension_semantics<parallel>, #tpu.dimension_semantics<arbitrary>], iteration_bounds = array<i64: 2, 4>, scalar_prefetch = 0 : i64, scratch_operands = 1 : i64, tpu.core_type = #tpu.core_type<tc>, window_params = [{transform_indices = @transform_0, window_bounds = array<i64: 8, 16, 128>}, {pipeline_mode = #tpu.pipeline_mode<synchronous>, transform_indices = @transform_1, window_bounds = array<i64: 128, 128>}, {pipeline_mode = #tpu.pipeline_mode<synchronous>, transform_indices = @transform_2, window_bounds = array<i64: 1, 128>}, {pipeline_mode = #tpu.pipeline_mode<synchronous>, transform_indices = @transform_3, window_bounds = array<i64: 128, 64>}, {pipeline_mode = #tpu.pipeline_mode<synchronous>, transform_indices = @transform_4, window_bounds = array<i64: 1, 64>}, {pipeline_mode = #tpu.pipeline_mode<synchronous>, transform_indices = @transform_5, window_bounds = array<i64: 1, 64>}, {pipeline_mode = #tpu.pipeline_mode<synchronous>, transform_indices = @transform_6, window_bounds = array<i64: 1, 1>}, {transform_indices = @transform_7, window_bounds = array<i64: 8, 1>}]} {
    %c0 = arith.constant 0 : index
    %c0_0 = arith.constant 0 : index
    %c0_1 = arith.constant 0 : index
    %0 = vector.load %arg2[%c0, %c0_0, %c0_1] : memref<8x16x128xbf16, #tpu.memory_space<vmem>>, vector<8x16x128xbf16>
    %1 = arith.extf %0 : vector<8x16x128xbf16> to vector<8x16x128xf32>
    %cst = arith.constant dense<0.000000e+00> : vector<8x128xf32>
    %2 = vector.multi_reduction <add>, %1, %cst [1] : vector<8x16x128xf32> to vector<8x128xf32>
    %c0_i32 = arith.constant 0 : i32
    %3 = arith.cmpi eq, %arg1, %c0_i32 : i32
    %4 = arith.extui %3 : i1 to i32
    %c0_i32_2 = arith.constant 0 : i32
    %5 = arith.cmpi ne, %4, %c0_i32_2 : i32
    scf.if %5 {
      %c0_8 = arith.constant 0 : index
      %c0_9 = arith.constant 0 : index
      %c0_10 = arith.constant 0 : index
      %12 = vector.load %arg2[%c0_8, %c0_9, %c0_10] : memref<8x16x128xbf16, #tpu.memory_space<vmem>>, vector<8x1x128xbf16>
      %13 = vector.shape_cast %12 : vector<8x1x128xbf16> to vector<8x128xbf16>
      %14 = arith.extf %13 : vector<8x128xbf16> to vector<8x128xf32>
      %cst_11 = arith.constant 0.000000e+00 : f32
      %15 = vector.broadcast %cst_11 : f32 to vector<8x128xf32>
      %16 = arith.subf %15, %14 : vector<8x128xf32>
      %c0_12 = arith.constant 0 : index
      %c0_13 = arith.constant 0 : index
      %17 = vector.load %arg10[%c0_12, %c0_13] : memref<8x128xf32, #tpu.memory_space<vmem>>, vector<8x128xf32>
      tpu.vector_store %arg10[%c0_12, %c0_13], %16 {strides = array<i32>} : memref<8x128xf32, #tpu.memory_space<vmem>>, vector<8x128xf32>,
    } else {
    }
    %c0_3 = arith.constant 0 : index
    %c0_4 = arith.constant 0 : index
    %6 = vector.load %arg10[%c0_3, %c0_4] : memref<8x128xf32, #tpu.memory_space<vmem>>, vector<8x128xf32>
    %7 = arith.addf %6, %2 : vector<8x128xf32>
    %c0_5 = arith.constant 0 : index
    %c0_6 = arith.constant 0 : index
    %8 = vector.load %arg10[%c0_5, %c0_6] : memref<8x128xf32, #tpu.memory_space<vmem>>, vector<8x128xf32>
    tpu.vector_store %arg10[%c0_5, %c0_6], %7 {strides = array<i32>} : memref<8x128xf32, #tpu.memory_space<vmem>>, vector<8x128xf32>,
    %c3_i32 = arith.constant 3 : i32
    %9 = arith.cmpi eq, %arg1, %c3_i32 : i32
    %10 = arith.extui %9 : i1 to i32
    %c0_i32_7 = arith.constant 0 : i32
    %11 = arith.cmpi ne, %10, %c0_i32_7 : i32
    scf.if %11 {
      %c0_8 = arith.constant 0 : index
      %c15 = arith.constant 15 : index
      %c0_9 = arith.constant 0 : index
      %12 = vector.load %arg2[%c0_8, %c15, %c0_9] : memref<8x16x128xbf16, #tpu.memory_space<vmem>>, vector<8x1x128xbf16>
      %13 = vector.shape_cast %12 : vector<8x1x128xbf16> to vector<8x128xbf16>
      %14 = arith.extf %13 : vector<8x128xbf16> to vector<8x128xf32>
      %c0_10 = arith.constant 0 : index
      %c0_11 = arith.constant 0 : index
      %15 = vector.load %arg10[%c0_10, %c0_11] : memref<8x128xf32, #tpu.memory_space<vmem>>, vector<8x128xf32>
      %16 = arith.subf %15, %14 : vector<8x128xf32>
      %cst_12 = arith.constant 0.0161290318 : f32
      %17 = vector.broadcast %cst_12 : f32 to vector<8x128xf32>
      %18 = arith.mulf %16, %17 : vector<8x128xf32>
      %c0_13 = arith.constant 0 : index
      %c0_14 = arith.constant 0 : index
      %19 = vector.load %arg3[%c0_13, %c0_14] : memref<128x128xf32, #tpu.memory_space<vmem>>, vector<128x128xf32>
      %cst_15 = arith.constant dense<0.000000e+00> : vector<8x128xf32>
      %20 = tpu.matmul %18, %19, %cst_15 {dimension_numbers = #tpu.dot_dimension_numbers<[1], [0], [0], [1], [0, 0, 1, 1], [], []>} : vector<8x128xf32>, vector<128x128xf32>, vector<8x128xf32> -> vector<8x128xf32>
      %c0_16 = arith.constant 0 : index
      %c0_17 = arith.constant 0 : index
      %21 = vector.load %arg4[%c0_16, %c0_17] : memref<1x128xf32, #tpu.memory_space<vmem>>, vector<1x128xf32>
      %22 = vector.broadcast %21 : vector<1x128xf32> to vector<8x128xf32>
      %23 = arith.addf %20, %22 : vector<8x128xf32>
      %24 = math.tanh %23 : vector<8x128xf32>
      %c0_18 = arith.constant 0 : index
      %c0_19 = arith.constant 0 : index
      %25 = vector.load %arg5[%c0_18, %c0_19] : memref<128x64xf32, #tpu.memory_space<vmem>>, vector<128x64xf32>
      %cst_20 = arith.constant dense<0.000000e+00> : vector<8x64xf32>
      %26 = tpu.matmul %24, %25, %cst_20 {dimension_numbers = #tpu.dot_dimension_numbers<[1], [0], [0], [1], [0, 0, 1, 1], [], []>} : vector<8x128xf32>, vector<128x64xf32>, vector<8x64xf32> -> vector<8x64xf32>
      %c0_21 = arith.constant 0 : index
      %c0_22 = arith.constant 0 : index
      %27 = vector.load %arg6[%c0_21, %c0_22] : memref<1x64xf32, #tpu.memory_space<vmem>>, vector<1x64xf32>
      %28 = vector.broadcast %27 : vector<1x64xf32> to vector<8x64xf32>
      %29 = arith.addf %26, %28 : vector<8x64xf32>
      %c0_23 = arith.constant 0 : index
      %c0_24 = arith.constant 0 : index
      %30 = vector.load %arg8[%c0_23, %c0_24] : memref<1x1xf32, #tpu.memory_space<vmem>>, vector<1x1xf32>
      %c0_25 = arith.constant 0 : index
      %c0_26 = arith.constant 0 : index
      %31 = vector.load %arg7[%c0_25, %c0_26] : memref<1x64xf32, #tpu.memory_space<vmem>>, vector<1x64xf32>
      %32 = vector.broadcast %31 : vector<1x64xf32> to vector<8x64xf32>
      %33 = arith.mulf %29, %32 : vector<8x64xf32>
      %cst_27 = arith.constant dense<0.000000e+00> : vector<8xf32>
      %34 = vector.multi_reduction <add>, %33, %cst_27 [1] : vector<8x64xf32> to vector<8xf32>
      %35 = vector.shape_cast %34 : vector<8xf32> to vector<8x1xf32>
      %36 = vector.broadcast %30 : vector<1x1xf32> to vector<8x1xf32>
      %37 = arith.addf %35, %36 : vector<8x1xf32>
      %c0_28 = arith.constant 0 : index
      %c0_29 = arith.constant 0 : index
      %38 = vector.load %arg9[%c0_28, %c0_29] : memref<8x1xf32, #tpu.memory_space<vmem>>, vector<8x1xf32>
      tpu.vector_store %arg9[%c0_28, %c0_29], %37 {strides = array<i32>} : memref<8x1xf32, #tpu.memory_space<vmem>>, vector<8x1xf32>,
    } else {
    }
    return
  }
  func.func @transform_0(%arg0: i32, %arg1: i32) -> (i32, i32, i32) {
    %c0_i32 = arith.constant 0 : i32
    %c0_i32_0 = arith.constant 0 : i32
    return %arg0, %arg1, %c0_i32 : i32, i32, i32
  }
  func.func @transform_1(%arg0: i32, %arg1: i32) -> (i32, i32) {
    %c0_i32 = arith.constant 0 : i32
    %c0_i32_0 = arith.constant 0 : i32
    %c0_i32_1 = arith.constant 0 : i32
    return %c0_i32, %c0_i32_0 : i32, i32
  }
  func.func @transform_2(%arg0: i32, %arg1: i32) -> (i32, i32) {
    %c0_i32 = arith.constant 0 : i32
    %c0_i32_0 = arith.constant 0 : i32
    %c0_i32_1 = arith.constant 0 : i32
    return %c0_i32, %c0_i32_0 : i32, i32
  }
  func.func @transform_3(%arg0: i32, %arg1: i32) -> (i32, i32) {
    %c0_i32 = arith.constant 0 : i32
    %c0_i32_0 = arith.constant 0 : i32
    %c0_i32_1 = arith.constant 0 : i32
    return %c0_i32, %c0_i32_0 : i32, i32
  }
  func.func @transform_4(%arg0: i32, %arg1: i32) -> (i32, i32) {
    %c0_i32 = arith.constant 0 : i32
    %c0_i32_0 = arith.constant 0 : i32
    %c0_i32_1 = arith.constant 0 : i32
    return %c0_i32, %c0_i32_0 : i32, i32
  }
  func.func @transform_5(%arg0: i32, %arg1: i32) -> (i32, i32) {
    %c0_i32 = arith.constant 0 : i32
    %c0_i32_0 = arith.constant 0 : i32
    %c0_i32_1 = arith.constant 0 : i32
    return %c0_i32, %c0_i32_0 : i32, i32
  }
  func.func @transform_6(%arg0: i32, %arg1: i32) -> (i32, i32) {
    %c0_i32 = arith.constant 0 : i32
    %c0_i32_0 = arith.constant 0 : i32
    %c0_i32_1 = arith.constant 0 : i32
    return %c0_i32, %c0_i32_0 : i32, i32
  }
  func.func @transform_7(%arg0: i32, %arg1: i32) -> (i32, i32) {
    %c0_i32 = arith.constant 0 : i32
    %c0_i32_0 = arith.constant 0 : i32
    return %arg0, %c0_i32 : i32, i32
  }
}

</mosaic_0001>

<bundles_post_ra>
// kernel: tpu_custom_call.1
= control target key start
LH: loop header
LB: loop body
LE: loop exit
PB: predicated region body
PF: predicated region fallthrough
CT: control target
= control target key end

     0   :  { %s1572_s0 = inlined_call_operand.hbm [shape: bf16[16,64,128], index: 0, kind: input, shape index: {}]   ;;  %s1573_s1 = inlined_call_operand.vmem [shape: f32[128,128], index: 1, kind: input, shape index: {}]   ;;  %s1574_s2 = inlined_call_operand.vmem [shape: f32[1,128], index: 2, kind: input, shape index: {}]   ;;  %s1575_s3 = inlined_call_operand.vmem [shape: f32[128,64], index: 3, kind: input, shape index: {}]   ;;  %s1576_s4 = inlined_call_operand.vmem [shape: f32[1,64], index: 4, kind: input, shape index: {}]   ;;  %s1577_s5 = inlined_call_operand.vmem [shape: f32[1,64], index: 5, kind: input, shape index: {}]   ;;  %s1578_s6 = inlined_call_operand.<no memory space> [shape: f32[1,1], index: 6, kind: input, shape index: {}]   ;;  %s1579_s7 = inlined_call_operand.vmem [shape: f32[16,1], index: 7, kind: output, shape index: {}]  }
   0x1   :  { %v12_v0 = vstv %s1578_s6 }
   0x2   :  { %13 = vst [vmem:[#allocation3] sm:$0x1] %v12_v0 }
   0x3   :  { %14 = vsyncpa [#allocation5], 0 }
   0x4   :  { %16 = vsyncpa [#allocation5 + $0x1], 0  ;;  %s1268_s26 = smov 0   ;;  %s1270_s27 = smov 0  }
   0x5   :  { %s1272_s28 = smov 0   ;;  %s1274_s29 = smov 0  }
   0x6   :  { %s1276_s30 = smov 0   ;;  %s1278_s8 = smov 0  }
   0x7   :  { %s1280_s9 = smov 0   ;;  %s1282_s10 = smov 0  }
   0x8 LB: > { %s31_s6 = sadd.s32 1, %s1206_s8  ;;  %s34_s11 = sadd.s32 1, %s1210_s9  ;;  %s1214_s10 = sphi %s1282_s10, %s22_s10   ;;  %s1210_s9 = sphi %s1280_s9, %s1594_s9   ;;  %s1206_s8 = sphi %s1278_s8, %s1593_s8   ;;  %s1202_s30 = sphi %s1276_s30, %s1592_s30   ;;  %s1198_s29 = sphi %s1274_s29, %s1591_s29   ;;  %s1194_s28 = sphi %s1272_s28, %s1590_s28   ;;  %s1190_s27 = sphi %s1270_s27, %s1589_s27   ;;  %s1186_s26 = sphi %s1268_s26, %s1588_s26  }
   0x9   : > { %p32_p0 = scmp.ge.s32.totalorder %s31_s6, 4  ;;  %s850_s12 = sadd.s32 4294967295, %s1214_s10  }
   0xa   : > { %p50_p1 = scmp.ne.s32.totalorder %s1194_s28, %s1190_s27  ;;  %p51_p2 = scmp.eq.s32.totalorder %s1214_s10, 0 }
   0xb   : > { %s1596_s6 = smov (%p32_p0, %s31_s6), 0  ;;  %s1598_s11 = smov (!%p32_p0, %s34_s11), %s1210_s9 }
   0xc   : > { %1582 = sst [smem:[#allocation10_spill]] %s1596_s6  ;;  %s39_s13 = ssub.s32 %s1206_s8, %s1596_s6 }
   0xd   : > { %p36_p3 = scmp.ge.s32.totalorder %s1598_s11, 2  ;;  %p56_p4 = scmp.ne.s32.totalorder %s1190_s27, %s1186_s26 }
   0xe   : > { %p1318_p5 = por %p51_p2, %p50_p1  ;;  %p57_p6 = scmp.eq.s32.totalorder %s850_s12, 0 }
   0xf   : > { %s1600_s11 = smov (%p36_p3, %s1598_s11), 0  ;;  %s43_s18 = sadd.s32 1, %s1194_s28 }
  0x10   : > { %1584 = sst [smem:[#allocation11_spill]] %s1600_s11  ;;  %p1324_p7 = por %p57_p6, %p56_p4 }
  0x11   : > { %s38_s16 = ssub.s32 %s1210_s9, %s1600_s11  ;;  %p853_p9 = scmp.ge.s32.totalorder %s1214_s10, 8 }
  0x12   : > { %s40_s17 = sor.u32 %s39_s13, %s38_s16 }
  0x13   : > { %p41_p8 = scmp.eq.s32.totalorder %s40_s17, 0  ;;  %246 = sbr.rel (%p853_p9) target bundleno = 42 (0x2a), region = 40 }
  0x15   : > { %s1332_s19 = scalar_select %p41_p8, %s1194_s28, %s43_s18  }
  0x1a   : > { %s250_s20 = sand.u32 1, %s1194_s28   ;;  %s856_s21 = sshll.u32 %s1206_s8, 1 }
  0x1b   : > { %s854_s22 = sshll.u32 %s250_s20, 6  ;;  %s872_s23 = sshll.u32 %s1210_s9, 6 }
  0x1c   : > { %s261_s24 = sadd.s32 %s872_s23, %s856_s21  ;;  %s254_s25 = scalar_lea.vmem [#allocation4], %s854_s22 }
  0x1d   : > { %s276_s26 = sshll.u32 %s254_s25, 4  ;;  %s858_s12 = sshll.u32 %s261_s24, 6  ;;  %s277_s26 = int_to_ptr.vmem [resolvable:$true] %s276_s26 }
  0x1e   : > { %s1064_s13 = scalar_select %p1318_p5, [#allocation0], [#allocation8] }
  0x1f   : > { %s1216_s16 = smov 512   ;;  %s1217_s18 = smov 128  }
  0x20   : > { %1065 = sst [smem:[#allocation7]] (%p1318_p5), %s1216_s16  ;;  %s1218_s11 = smov 2  }
  0x21   : > { %s268_s17 = sld [smem:[%s1064_s13]]   ;;  %s1219_s21 = smov 64  }
  0x22   : > { %1066 = sst [smem:[#allocation7 + $0x1]] (%p1318_p5), %s1217_s18  ;;  %s263_s24 = scalar_lea.hbm %s1572_s0, %s858_s12 }
  0x23   : > { %1067 = sst [smem:[#allocation7 + $0x2]] (%p1318_p5), %s1218_s11  ;;  %s1220_s25 = smov 4  }
  0x24   : > { %1068 = sst [smem:[#allocation7 + $0x3]] (%p1318_p5), %s1219_s21  ;;  %s251_s6 = scalar_lea.sflag [#allocation5], %s250_s20 }
  0x25   : > { %1069 = sst [smem:[#allocation7 + $0x4]] (%p1318_p5), %s1219_s21  ;;  %s1221_s18 = smov [#allocation6]  }
  0x26   : > { %1070 = sst [smem:[#allocation7 + $0x5]] (%p1318_p5), %s1220_s25 }
  0x27   : > { %s859_s13 = sshll.u32 %s268_s17, 26 }
  0x28   : > { %s860_s16 = sadd.s32 134217728, %s859_s13 }
  0x29   : > { %1071 = dma.general (%p1318_p5), %s263_s24, 1024, %s277_s26, %s251_s6, %s1221_s18, [#allocation7], %s860_s16, 0  }
  0x2a PF: > { %p861_p10 = scmp.ge.s32.totalorder %s1214_s10, 1  ;;  %p297_p11 = scmp.lt.s32.totalorder %s1214_s10, 9 }
  0x2c   : > { %p298_p12 = pnand %p861_p10, %p297_p11 }
  0x2d   : > { %s303_s11 = sand.u32 (!%p298_p12), 1, %s1190_s27  }
  0x2e   : > { %301 = sbr.rel (%p298_p12) target bundleno = 710 (0x2c6), region = 48  ;;  %s862_s12 = sshll.u32 (!%p298_p12), %s303_s11, 6 }
  0x2f   : > { %s304_s21 = scalar_lea.sflag (!%p298_p12), [#allocation5], %s303_s11  ;;  %s1360_s22 = scalar_lea.vmem (!%p298_p12), [#allocation4], %s862_s12 }
  0x35   : > { %1181 = dma.done.wait (%p1324_p7), %s304_s21, 1024  }
  0x36   : > { %1183 = vsyncadd (%p1324_p7), %s304_s21, 4294966272  ;;  %p339_p13 = scmp.lt.s32.totalorder %s1202_s30, 1  ;;  %v874_v1 = vld [vmem:[%s1360_s22] sm:$0xff]   ;;  %v905_v2 = vld [vmem:[%s1360_s22 + $0x8] sm:$0xff]   ;;  %p864_p0 = scmp.ne.s32.totalorder %s1198_s29, 0 }
  0x37   : > { %v906_v3 = vld [vmem:[%s1360_s22 + $0x10] sm:$0xff]   ;;  %v875_v4 = vunpack.c.l.bf16 %v874_v1  ;;  %v876_v5 = vunpack.c.h.bf16 %v874_v1  ;;  %v879_v6 = vunpack.c.l.bf16 %v905_v2  ;;  %v880_v7 = vunpack.c.h.bf16 %v905_v2  ;;  %v907_v8 = vld [vmem:[%s1360_s22 + $0x18] sm:$0xff]   ;;  %v908_v9 = vld [vmem:[%s1360_s22 + $0x20] sm:$0xff]  }
  0x38   : > { %s1602_s30 = smov (!%p339_p13, %s1202_s30), 1  ;;  %v909_v10 = vld [vmem:[%s1360_s22 + $0x28] sm:$0xff]   ;;  %v883_v11 = vunpack.c.l.bf16 %v906_v3  ;;  %v884_v12 = vunpack.c.h.bf16 %v906_v3  ;;  %v887_v13 = vunpack.c.l.bf16 %v907_v8  ;;  %v888_v14 = vunpack.c.h.bf16 %v907_v8  ;;  %v910_v15 = vld [vmem:[%s1360_s22 + $0x30] sm:$0xff]   ;;  %v911_v16 = vld [vmem:[%s1360_s22 + $0x38] sm:$0xff]  }
  0x39   : > { %s863_s6 = sshll.u32 %s1602_s30, 3  ;;  %v891_v17 = vunpack.c.l.bf16 %v908_v9  ;;  %v892_v18 = vunpack.c.h.bf16 %v908_v9  ;;  %v895_v19 = vunpack.c.l.bf16 %v909_v10  ;;  %v896_v20 = vunpack.c.h.bf16 %v909_v10 }
  0x3a   : > { %s1371_s26 = scalar_lea.vmem %s1579_s7, %s863_s6  ;;  %v899_v21 = vunpack.c.l.bf16 %v910_v15  ;;  %v900_v22 = vunpack.c.h.bf16 %v910_v15  ;;  %v903_v23 = vunpack.c.l.bf16 %v911_v16  ;;  %v904_v24 = vunpack.c.h.bf16 %v911_v16 }
  0x3b   : > { %v375_v25 = vadd.f32 %v876_v5, %v875_v4  ;;  %v382_v26 = vadd.f32 %v880_v7, %v879_v6  ;;  %v389_v27 = vadd.f32 %v884_v12, %v883_v11  ;;  %v396_v28 = vadd.f32 %v888_v14, %v887_v13 }
  0x3c   : > { %v403_v29 = vadd.f32 %v892_v18, %v891_v17  ;;  %v410_v30 = vadd.f32 %v896_v20, %v895_v19  ;;  %v417_v31 = vadd.f32 %v900_v22, %v899_v21  ;;  %v424_v32 = vadd.f32 %v904_v24, %v903_v23  ;;  %v435_v17 = vld [vmem:[%s1360_s22] sm:$0x1] (!%p864_p0)  ;;  %v436_v18 = vld [vmem:[%s1360_s22 + $0x8] sm:$0x1] (!%p864_p0)  ;;  %v437_v19 = vld [vmem:[%s1360_s22 + $0x10] sm:$0x1] (!%p864_p0) }
  0x3d   : > { %v376_v33 = vrot.slane %v375_v25, 4  ;;  %v383_v34 = vrot.slane %v382_v26, 4  ;;  %v390_v35 = vrot.slane %v389_v27, 4  ;;  %v397_v36 = vrot.slane %v396_v28, 4  ;;  %v438_v20 = vld [vmem:[%s1360_s22 + $0x18] sm:$0x1] (!%p864_p0) }
  0x3e   : > { %v404_v37 = vrot.slane %v403_v29, 4  ;;  %v411_v38 = vrot.slane %v410_v30, 4  ;;  %v418_v39 = vrot.slane %v417_v31, 4  ;;  %v425_v40 = vrot.slane %v424_v32, 4  ;;  %v439_v21 = vld [vmem:[%s1360_s22 + $0x20] sm:$0x1] (!%p864_p0) }
  0x3f   : > { %v377_v41 = vadd.f32 %v376_v33, %v375_v25  ;;  %v384_v42 = vadd.f32 %v383_v34, %v382_v26  ;;  %v391_v43 = vadd.f32 %v390_v35, %v389_v27  ;;  %v398_v44 = vadd.f32 %v397_v36, %v396_v28  ;;  %v440_v22 = vld [vmem:[%s1360_s22 + $0x28] sm:$0x1] (!%p864_p0)  ;;  %v441_v26 = vld [vmem:[%s1360_s22 + $0x30] sm:$0x1] (!%p864_p0)  ;;  %v442_v27 = vld [vmem:[%s1360_s22 + $0x38] sm:$0x1] (!%p864_p0) }
  0x40   : > { %v405_v45 = vadd.f32 %v404_v37, %v403_v29  ;;  %v412_v46 = vadd.f32 %v411_v38, %v410_v30  ;;  %v419_v47 = vadd.f32 %v418_v39, %v417_v31  ;;  %v426_v48 = vadd.f32 %v425_v40, %v424_v32 }
  0x41   : > { %v378_v49 = vrot.slane %v377_v41, 2  ;;  %v385_v50 = vrot.slane %v384_v42, 2  ;;  %v392_v51 = vrot.slane %v391_v43, 2  ;;  %v399_v52 = vrot.slane %v398_v44, 2 }
  0x42   : > { %v406_v53 = vrot.slane %v405_v45, 2  ;;  %v413_v54 = vrot.slane %v412_v46, 2  ;;  %v420_v55 = vrot.slane %v419_v47, 2  ;;  %v427_v56 = vrot.slane %v426_v48, 2  ;;  %434 = sbr.rel (%p864_p0) target bundleno = 87 (0x57), region = 56 }
  0x43   : > { %v379_v57 = vadd.f32 %v378_v49, %v377_v41  ;;  %v386_v58 = vadd.f32 %v385_v50, %v384_v42  ;;  %v393_v59 = vadd.f32 %v392_v51, %v391_v43  ;;  %v400_v60 = vadd.f32 %v399_v52, %v398_v44 }
  0x44   : > { %v407_v61 = vadd.f32 %v406_v53, %v405_v45  ;;  %v414_v62 = vadd.f32 %v413_v54, %v412_v46  ;;  %v421_v63 = vadd.f32 %v420_v55, %v419_v47  ;;  %v428_v0 = vadd.f32 %v427_v56, %v426_v48 }
  0x45   : > { %v380_v1 = vrot.slane %v379_v57, 1  ;;  %v387_v2 = vrot.slane %v386_v58, 1  ;;  %v394_v3 = vrot.slane %v393_v59, 1  ;;  %v401_v4 = vrot.slane %v400_v60, 1 }
  0x46   : > { %v408_v5 = vrot.slane %v407_v61, 1  ;;  %v415_v6 = vrot.slane %v414_v62, 1  ;;  %v422_v7 = vrot.slane %v421_v63, 1  ;;  %v429_v8 = vrot.slane %v428_v0, 1 }
  0x47   : > { %v381_v9 = vadd.f32 %v380_v1, %v379_v57  ;;  %v388_v10 = vadd.f32 %v387_v2, %v386_v58  ;;  %v395_v11 = vadd.f32 %v394_v3, %v393_v59  ;;  %v402_v12 = vadd.f32 %v401_v4, %v400_v60 }
  0x48   : > { %v1381_v13 = vadd.f32 %v408_v5, %v407_v61  ;;  %v1383_v14 = vadd.f32 %v415_v6, %v414_v62  ;;  %v1385_v15 = vadd.f32 %v422_v7, %v421_v63  ;;  %v1387_v16 = vadd.f32 %v429_v8, %v428_v0 }
  0x49   : > { %v443_v23 = vunpack.c.l.bf16 %v435_v17  ;;  %v444_v24 = vunpack.c.l.bf16 %v436_v18  ;;  %v445_v25 = vunpack.c.l.bf16 %v437_v19  ;;  %v446_v28 = vunpack.c.l.bf16 %v438_v20 }
  0x4a   : > { %v447_v29 = vunpack.c.l.bf16 %v439_v21  ;;  %v448_v30 = vunpack.c.l.bf16 %v440_v22  ;;  %vm468_vm0 = vcmask 1041409   ;;  %v449_v31 = vunpack.c.l.bf16 %v441_v26 }
  0x4b   : > { %v450_v32 = vunpack.c.l.bf16 %v442_v27  ;;  %v451_v33 = vsub.f32 0.0, %v443_v23  ;;  %v452_v34 = vsub.f32 0.0, %v444_v24  ;;  %v453_v35 = vsub.f32 0.0, %v445_v25 }
  0x4c   : > { %v454_v36 = vsub.f32 0.0, %v446_v28  ;;  %v455_v37 = vsub.f32 0.0, %v447_v29  ;;  %v456_v38 = vsub.f32 0.0, %v448_v30  ;;  %v457_v39 = vsub.f32 0.0, %v449_v31 }
  0x4d   : > { %v458_v40 = vsub.f32 0.0, %v450_v32  ;;  %v467_v41 = vrot.slane %v452_v34, 7  ;;  %vm471_vm1 = vcmask 1042434   ;;  %v470_v42 = vrot.slane %v453_v35, 6 }
  0x4e   : > { %v473_v43 = vrot.slane %v454_v36, 5  ;;  %vm474_vm2 = vcmask 1043459   ;;  %v476_v44 = vrot.slane %v455_v37, 4  ;;  %vm477_vm3 = vcmask 1044484  }
  0x4f   : > { %v469_v45 = vsel %vm468_vm0, %v467_v41, %v451_v33  ;;  %v479_v46 = vrot.slane %v456_v38, 3  ;;  %vm480_vm4 = vcmask 1045509   ;;  %v482_v48 = vrot.slane %v457_v39, 2 }
  0x50   : > { %v472_v47 = vsel %vm471_vm1, %v470_v42, %v469_v45  ;;  %vm483_vm5 = vcmask 1046534   ;;  %v485_v50 = vrot.slane %v458_v40, 1  ;;  %vm486_vm6 = vcmask 1047559  }
  0x51   : > { %v475_v49 = vsel %vm474_vm2, %v473_v43, %v472_v47 }
  0x52   : > { %v478_v51 = vsel %vm477_vm3, %v476_v44, %v475_v49 }
  0x53   : > { %v481_v52 = vsel %vm480_vm4, %v479_v46, %v478_v51 }
  0x54   : > { %v484_v53 = vsel %vm483_vm5, %v482_v48, %v481_v52 }
  0x55   : > { %v487_v54 = vsel %vm486_vm6, %v485_v50, %v484_v53 }
  0x56   : > { %489 = vst [vmem:[#allocation2] sm:$0xff] %v487_v54 }
  0x57 PF: > { %vm499_vm7 = vcmask 1041409   ;;  %vm501_vm8 = vcmask 1042434   ;;  %vm503_vm9 = vcmask 1043459   ;;  %vm505_vm10 = vcmask 1044484   ;;  %p865_p1 = scmp.ne.s32.totalorder %s1198_s29, 3 }
  0x58   : > { %v500_v55 = vsel %vm499_vm7, %v388_v10, %v381_v9  ;;  %vm507_vm11 = vcmask 1045509   ;;  %vm509_vm12 = vcmask 1046534   ;;  %vm511_vm13 = vcmask 1047559   ;;  %v562_v0 = vld [vmem:[%s1573_s1] sm:$0xff] (!%p865_p1)  ;;  %v563_v1 = vld [vmem:[%s1573_s1 + $0x8] sm:$0xff] (!%p865_p1)  ;;  %v564_v2 = vld [vmem:[%s1573_s1 + $0x10] sm:$0xff] (!%p865_p1) }
  0x59   : > { %v502_v56 = vsel %vm501_vm8, %v395_v11, %v500_v55  ;;  %v1222_v3 = vmov (!%p865_p1), 0.0|0.0   ;;  %v1017_v4 = vpack.c.bf16 (!%p865_p1), %v563_v1, %v562_v0  ;;  %v565_v5 = vld [vmem:[%s1573_s1 + $0x18] sm:$0xff] (!%p865_p1)  ;;  %vm1223_vm14 = vmmov (!%p865_p1), 0   ;;  %v566_v8 = vld [vmem:[%s1573_s1 + $0x20] sm:$0xff] (!%p865_p1)  ;;  %v567_v9 = vld [vmem:[%s1573_s1 + $0x28] sm:$0xff] (!%p865_p1) }
  0x5a   : > { %v504_v57 = vsel %vm503_vm9, %v402_v12, %v502_v56  ;;  %1016 = vmatprep.subr.bf16.mxu0 (!%p865_p1), %v1222_v3  ;;  %v1224_v6 = vmov (!%p865_p1), 0.0   ;;  %1040 = vmatprep.subr.bf16.mxu1 (!%p865_p1), %v1222_v3  ;;  %v1020_v7 = vpack.c.bf16 (!%p865_p1), %v565_v5, %v564_v2  ;;  %v520_v10 = vld [vmem:[%s1360_s22 + $0x4] sm:$0x8] (!%p865_p1)  ;;  %v521_v11 = vld [vmem:[%s1360_s22 + $0xc] sm:$0x8] (!%p865_p1)  ;;  %v1023_v17 = vpack.c.bf16 (!%p865_p1), %v567_v9, %v566_v8  ;;  %v656_v26 = vld [vmem:[%s1575_s3] sm:$0xff] (!%p865_p1) }
  0x5b   : > { %v506_v58 = vsel %vm505_vm10, %v1381_v13, %v504_v57  ;;  %519 = sbr.rel (%p865_p1) target bundleno = 710 (0x2c6), region = 60  ;;  %978 = vmatprep.mubr.msk.f32.mxu0 (!%p865_p1), %vm1223_vm14, %v1224_v6  ;;  %1013 = vmatprep.mubr.msk.f32.mxu1 (!%p865_p1), %vm1223_vm14, %v1224_v6  ;;  %v522_v12 = vld [vmem:[%s1360_s22 + $0x14] sm:$0x8] (!%p865_p1)  ;;  %v523_v13 = vld [vmem:[%s1360_s22 + $0x1c] sm:$0x8] (!%p865_p1)  ;;  %v568_v18 = vld [vmem:[%s1573_s1 + $0x30] sm:$0xff] (!%p865_p1) }
  0x5c   : > { %v508_v60 = vsel %vm507_vm11, %v1383_v14, %v506_v58  ;;  %1018 = vmatpush3.bf16.msra.mxu0 (!%p865_p1), %v1017_v4  ;;  %v524_v14 = vld [vmem:[%s1360_s22 + $0x24] sm:$0x8] (!%p865_p1)  ;;  %v569_v19 = vld [vmem:[%s1573_s1 + $0x38] sm:$0xff] (!%p865_p1)  ;;  %v530_v21 = vunpack.c.l.bf16 (!%p865_p1), %v522_v12  ;;  %v531_v22 = vunpack.c.l.bf16 (!%p865_p1), %v523_v13  ;;  %v526_v24 = vld [vmem:[%s1360_s22 + $0x34] sm:$0x8] (!%p865_p1)  ;;  %vm758_vm15 = vcmask (!%p865_p1), 523264  }
  0x5d   : > { %v490_v59 = vld [vmem:[#allocation2] sm:$0xff]  ;;  %v510_v61 = vsel %vm509_vm12, %v1385_v15, %v508_v60  ;;  %1019 = vmatprep.subr.bf16.mxu0 (!%p865_p1), %v1222_v3  ;;  %v528_v15 = vunpack.c.l.bf16 (!%p865_p1), %v520_v10  ;;  %v525_v20 = vld [vmem:[%s1360_s22 + $0x2c] sm:$0x8] (!%p865_p1)  ;;  %v532_v23 = vunpack.c.l.bf16 (!%p865_p1), %v524_v14  ;;  %v657_v27 = vld [vmem:[%s1575_s3 + $0x8] sm:$0xff] (!%p865_p1)  ;;  %v1026_v36 = vpack.c.bf16 (!%p865_p1), %v569_v19, %v568_v18 }
  0x5e   : > { %v512_v62 = vsel %vm511_vm13, %v1387_v16, %v510_v61  ;;  %v529_v16 = vunpack.c.l.bf16 (!%p865_p1), %v521_v11  ;;  %v533_v28 = vunpack.c.l.bf16 (!%p865_p1), %v525_v20  ;;  %v548_v30 = vrot.slane (!%p865_p1), %v530_v21, 5  ;;  %v658_v32 = vld [vmem:[%s1575_s3 + $0x10] sm:$0xff] (!%p865_p1)  ;;  %v659_v33 = vld [vmem:[%s1575_s3 + $0x18] sm:$0xff] (!%p865_p1)  ;;  %v570_v38 = vld [vmem:[%s1573_s1 + $0x40] sm:$0xff] (!%p865_p1) }
  0x5f   : > { %v514_v63 = vadd.f32 %v512_v62, %v490_v59  ;;  %v545_v25 = vrot.slane (!%p865_p1), %v528_v15, 7  ;;  %v550_v31 = vrot.slane (!%p865_p1), %v531_v22, 4  ;;  %v552_v34 = vrot.slane (!%p865_p1), %v532_v23, 3  ;;  %v571_v39 = vld [vmem:[%s1573_s1 + $0x48] sm:$0xff] (!%p865_p1)  ;;  %v660_v45 = vld [vmem:[%s1575_s3 + $0x20] sm:$0xff] (!%p865_p1)  ;;  %v572_v49 = vld [vmem:[%s1573_s1 + $0x50] sm:$0xff] (!%p865_p1) }
  0x60   : > { %1021 = vmatpush3.bf16.msra.mxu0 (!%p865_p1), %v1020_v7  ;;  %v546_v29 = vrot.slane (!%p865_p1), %v529_v16, 6  ;;  %v1041_v35 = vpack.c.bf16 (!%p865_p1), %v657_v27, %v656_v26  ;;  %v534_v40 = vunpack.c.l.bf16 (!%p865_p1), %v526_v24  ;;  %v1044_v42 = vpack.c.bf16 (!%p865_p1), %v659_v33, %v658_v32  ;;  %v661_v46 = vld [vmem:[%s1575_s3 + $0x28] sm:$0xff] (!%p865_p1)  ;;  %v573_v50 = vld [vmem:[%s1573_s1 + $0x58] sm:$0xff] (!%p865_p1)  ;;  %v662_v55 = vld [vmem:[%s1575_s3 + $0x30] sm:$0xff] (!%p865_p1) }
  0x61   : > { %515 = vst [vmem:[#allocation2] sm:$0xff] %v514_v63  ;;  %1022 = vmatprep.subr.bf16.mxu0 (!%p865_p1), %v1222_v3  ;;  %v554_v44 = vrot.slane (!%p865_p1), %v533_v28, 2  ;;  %v1029_v48 = vpack.c.bf16 (!%p865_p1), %v571_v39, %v570_v38  ;;  %v527_v51 = vld [vmem:[%s1360_s22 + $0x3c] sm:$0x8] (!%p865_p1)  ;;  %v1047_v53 = vpack.c.bf16 (!%p865_p1), %v661_v46, %v660_v45  ;;  %v663_v56 = vld [vmem:[%s1575_s3 + $0x38] sm:$0xff] (!%p865_p1)  ;;  %v1032_v57 = vpack.c.bf16 (!%p865_p1), %v573_v50, %v572_v49  ;;  %v574_v59 = vld [vmem:[%s1573_s1 + $0x60] sm:$0xff] (!%p865_p1) }
  0x62   : > { %v547_v37 = vsel %vm499_vm7, %v546_v29, %v545_v25  ;;  %1042 = vmatpush3.bf16.msra.mxu1 %v1041_v35  ;;  %v556_v52 = vrot.slane %v534_v40, 1  ;;  %v535_v58 = vunpack.c.l.bf16 %v527_v51  ;;  %v575_v60 = vld [vmem:[%s1573_s1 + $0x68] sm:$0xff]  ;;  %v1050_v62 = vpack.c.bf16 %v663_v56, %v662_v55  ;;  %v664_v63 = vld [vmem:[%s1575_s3 + $0x40] sm:$0xff]  ;;  %v576_v5 = vld [vmem:[%s1573_s1 + $0x70] sm:$0xff] }
  0x63   : > { %v549_v41 = vsel %vm501_vm8, %v548_v30, %v547_v37  ;;  %1043 = vmatprep.subr.bf16.mxu1 %v1222_v3  ;;  %v665_v0 = vld [vmem:[%s1575_s3 + $0x48] sm:$0xff]  ;;  %v1035_v1 = vpack.c.bf16 %v575_v60, %v574_v59  ;;  %v577_v6 = vld [vmem:[%s1573_s1 + $0x78] sm:$0xff]  ;;  %v666_v11 = vld [vmem:[%s1575_s3 + $0x50] sm:$0xff]  ;;  %vm769_vm0 = vcmask 7168  }
  0x64   : > { %1024 = vmatpush3.bf16.msra.mxu0 %v1023_v17  ;;  %v551_v43 = vsel %vm503_vm9, %v550_v31, %v549_v41  ;;  %v1053_v7 = vpack.c.bf16 %v665_v0, %v664_v63  ;;  %v1038_v9 = vpack.c.bf16 %v577_v6, %v576_v5  ;;  %v667_v12 = vld [vmem:[%s1575_s3 + $0x58] sm:$0xff]  ;;  %v668_v14 = vld [vmem:[%s1575_s3 + $0x60] sm:$0xff]  ;;  %v669_v15 = vld [vmem:[%s1575_s3 + $0x68] sm:$0xff] }
  0x65   : > { %1025 = vmatprep.subr.bf16.mxu0 %v1222_v3  ;;  %v553_v47 = vsel %vm505_vm10, %v552_v34, %v551_v43  ;;  %v1056_v13 = vpack.c.bf16 %v667_v12, %v666_v11  ;;  %v1059_v16 = vpack.c.bf16 %v669_v15, %v668_v14  ;;  %v670_v17 = vld [vmem:[%s1575_s3 + $0x70] sm:$0xff]  ;;  %v671_v18 = vld [vmem:[%s1575_s3 + $0x78] sm:$0xff]  ;;  %v866_v20 = vld [vmem:[%s1574_s2] ss:$0 sm:$0xff] }
  0x66   : > { %1045 = vmatpush3.bf16.msra.mxu1 %v1044_v42  ;;  %v555_v54 = vsel %vm507_vm11, %v554_v44, %v553_v47  ;;  %v1062_v19 = vpack.c.bf16 %v671_v18, %v670_v17  ;;  %v867_v25 = vld [vmem:[%s1576_s4] ss:$0 sm:$0xff]  ;;  %v869_v31 = vld [vmem:[#allocation3] ss:$0 sm:$0xff] }
  0x67   : > { %1046 = vmatprep.subr.bf16.mxu1 %v1222_v3  ;;  %v557_v61 = vsel %vm509_vm12, %v556_v52, %v555_v54 }
  0x68   : > { %1027 = vmatpush3.bf16.msra.mxu0 %v1026_v36  ;;  %v536_v2 = vld [vmem:[#allocation2] sm:$0xff]  ;;  %v558_v4 = vsel %vm511_vm13, %v535_v58, %v557_v61 }
  0x69   : > { %1028 = vmatprep.subr.bf16.mxu0 %v1222_v3  ;;  %v560_v8 = vsub.f32 %v536_v2, %v558_v4 }
  0x6a   : > { %1048 = vmatpush3.bf16.msra.mxu1 %v1047_v53 }
  0x6b   : > { %1049 = vmatprep.subr.bf16.mxu1 %v1222_v3  ;;  %v561_v10 = vmul.f32 0.016129032, %v560_v8 }
  0x6c   : > { %1030 = vmatpush3.bf16.msra.mxu0 %v1029_v48 }
  0x6d   : > { %1031 = vmatprep.subr.bf16.mxu0 %v1222_v3 }
  0x6e   : > { %1051 = vmatpush3.bf16.msra.mxu1 %v1050_v62 }
  0x6f   : > { %1052 = vmatprep.subr.bf16.mxu1 %v1222_v3 }
  0x70   : > { %1033 = vmatpush3.bf16.msra.mxu0 %v1032_v57 }
  0x71   : > { %1034 = vmatprep.subr.bf16.mxu0 %v1222_v3 }
  0x72   : > { %1054 = vmatpush3.bf16.msra.mxu1 %v1053_v7 }
  0x73   : > { %1055 = vmatprep.subr.bf16.mxu1 %v1222_v3 }
  0x74   : > { %1036 = vmatpush3.bf16.msra.mxu0 %v1035_v1 }
  0x75   : > { %1037 = vmatprep.subr.bf16.mxu0 %v1222_v3 }
  0x76   : > { %1057 = vmatpush3.bf16.msra.mxu1 %v1056_v13 }
  0x77   : > { %1058 = vmatprep.subr.bf16.mxu1 %v1222_v3 }
  0x78   : > { %1039 = vmatpush3.bf16.msra.mxu0 %v1038_v9 }
  0x7a   : > { %1060 = vmatpush3.bf16.msra.mxu1 %v1059_v16 }
  0x7b   : > { %979 = vmatmul.mubr.f32.vlgmr.msra.gmra.mrb[0].mxu0 %v561_v10  ;;  %1061 = vmatprep.subr.bf16.mxu1 %v1222_v3  ;;  %v868_v3 = vld [vmem:[%s1577_s5] ss:$0 sm:$0xff] }
  0x7e   : > { %1063 = vmatpush3.bf16.msra.mxu1 %v1062_v19 }
 0x14e   : > { %v651_v21 = vpop.f32.mrb[0].mxu0 }
 0x14f   : > { %v652_v22 = vadd.f32 %v866_v20, %v651_v21  ;;  %v980_v23 = vpop.f32.mrb[1].mxu0 }
 0x151   : > { %1146 = vtanh.f32 %v652_v22 }
 0x15b   : > { %v1147_v24 = vpop.eup %1146 }
 0x15c   : > { %1014 = vmatmul.mubr.f32.vlgmr.msra.gmra.mrb[0].mxu1 %v1147_v24 }
 0x22f   : > { %v745_v26 = vpop.f32.mrb[0].mxu1 }
 0x230   : > { %v746_v27 = vadd.f32 %v867_v25, %v745_v26  ;;  %v1015_v28 = vpop.f32.mrb[1].mxu1 }
 0x232   : > { %v757_v29 = vmul.f32 %v868_v3, %v746_v27 }
 0x234   : > { %v759_v30 = vsel %vm758_vm15, %v757_v29, 0.0 }
 0x235   : > { %760 = vadd.xlane.f32.xlu0 %v759_v30 }
 0x2c2   : > { %v761_v32 = vpop.xlane.xlu0 %760 }
 0x2c3   : > { %v768_v33 = vadd.f32 %v869_v31, %v761_v32 }
 0x2c5   : > { %770 = vst.msk [vmem:[%s1371_s26] sm:$0xff] %vm769_vm0, %v768_v33 }
 0x2c6 PF: > { %s22_s10 = sadd.s32 1, %s1214_s10   ;;  %s1586_s24 = sld [smem:[#allocation10_spill]] }
 0x2c7   : > { %p19_p2 = scmp.ge.s32.totalorder %s22_s10, 10   ;;  %s1587_s25 = sld [smem:[#allocation11_spill]] }
 0x2c8   : > { %s1588_s26 = smov %s1190_s27  ;;  %s1589_s27 = smov %s1194_s28 }
 0x2c9   : > { %s1590_s28 = smov %s1332_s19  ;;  %s1591_s29 = smov %s1206_s8 }
 0x2ca   : > { %s1592_s30 = smov %s1210_s9  ;;  %21 = sbr.rel (!%p19_p2) target bundleno = 8 (0x8), region = 101 }
 0x2cc   : > { %s1593_s8 = smov %s1586_s24 }
 0x2cd   : > { %s1594_s9 = smov %s1587_s25 }
 0x2d1   :  { %790 = vsyncpa [#allocation5], 1 }
 0x2d2   :  { %792 = vsyncpa [#allocation5 + $0x1], 1 }

</bundles_post_ra>
